<compile_context>
chip_gen: v7x
topology: tpu7x:2x2x1
jax: 0.10.0
libtpu: 0.0.40
codegen_flags: <defaults>
</compile_context>

<pallas_src>
import functools

import jax
import jax.numpy as jnp
from jax.experimental import pallas as pl
from jax.experimental.pallas import tpu as pltpu


def _round_up(x, m):
    return (x + m - 1) // m * m


def _pad2(a, shape):
    return jnp.pad(a, ((0, shape[0] - a.shape[0]), (0, shape[1] - a.shape[1])))


def _rows_and_tile(n, max_tile=512):
    """Pad a row count and pick a row block size.

    Guarantees >= 2 row tiles whenever n > 8 so the 'parallel' row axis can shard across
    v7x's two TensorCores, while keeping tiles large (cap 512) to amortize per-step overhead.
    """
    n8 = max(_round_up(n, 8), 8)
    if n8 <= 8:
        return n8, n8
    ntiles = max(2, -(-n8 // max_tile))           # ceil-div, but at least 2 tiles
    tile = _round_up(-(-n8 // ntiles), 8)
    return ntiles * tile, tile


def _pick_tk(k):
    """Largest 128-multiple divisor of k that is <= 512 (k is always a 128 multiple here)."""
    for tk in (512, 384, 256, 128):
        if k % tk == 0:
            return tk
    return 128


# --------------------------- Pallas kernels ---------------------------

def _fused_linear2_single_kernel(a_ref, b_ref, w1_ref, w2_ref, bias_ref, out_ref, *, relu):
    """out = act(a @ W1 + b @ W2 + bias); whole K in one step -> no accumulator scratch."""
    r = (jnp.dot(a_ref[...], w1_ref[...], preferred_element_type=jnp.float32)
         + jnp.dot(b_ref[...], w2_ref[...], preferred_element_type=jnp.float32)
         + bias_ref[...])
    if relu:
        r = jnp.maximum(r, 0.0)
    out_ref[...] = r.astype(out_ref.dtype)


def _fused_linear2_multi_kernel(a_ref, b_ref, w1_ref, w2_ref, bias_ref, out_ref, acc_ref,
                                *, relu, tk):
    """K-tiled variant: W1/W2 fully VMEM-resident (sliced in-kernel), f32 accumulator scratch."""
    k = pl.program_id(1)

    @pl.when(k == 0)
    def _():
        acc_ref[...] = jnp.zeros_like(acc_ref)

    off = pl.multiple_of(k * tk, 128)
    acc_ref[...] += (
        jnp.dot(a_ref[...], w1_ref[pl.ds(off, tk), :], preferred_element_type=jnp.float32)
        + jnp.dot(b_ref[...], w2_ref[pl.ds(off, tk), :], preferred_element_type=jnp.float32)
    )

    @pl.when(k == pl.num_programs(1) - 1)
    def _():
        r = acc_ref[...] + bias_ref[...]        # f32 VPU math (v5e-safe)
        if relu:
            r = jnp.maximum(r, 0.0)
        out_ref[...] = r.astype(out_ref.dtype)


def fused_linear2(a, b, w1, w2, bias, *, relu, row_tile, out_dtype=jnp.float32):
    """a, b: (R, K) bf16; w1, w2: (K, C) bf16; bias: (1, C) f32 -> (R, C) out_dtype."""
    R, K = a.shape
    C = w1.shape[1]
    assert b.shape == (R, K) and w2.shape == (K, C) and bias.shape == (1, C)
    assert R % row_tile == 0 and K % 128 == 0 and C % 128 == 0

    if K <= 512:
        # Single K step (every call in this model): one-shot compute, no scratch at all.
        return pl.pallas_call(
            functools.partial(_fused_linear2_single_kernel, relu=relu),
            out_shape=jax.ShapeDtypeStruct((R, C), out_dtype),
            grid_spec=pltpu.PrefetchScalarGridSpec(
                num_scalar_prefetch=0,
                grid=(R // row_tile,),
                in_specs=[
                    pl.BlockSpec((row_tile, K), lambda i: (i, 0)),   # a
                    pl.BlockSpec((row_tile, K), lambda i: (i, 0)),   # b
                    pl.BlockSpec((K, C), lambda i: (0, 0)),          # W1 (resident)
                    pl.BlockSpec((K, C), lambda i: (0, 0)),          # W2 (resident)
                    pl.BlockSpec((1, C), lambda i: (0, 0)),          # bias (resident)
                ],
                out_specs=pl.BlockSpec((row_tile, C), lambda i: (i, 0)),
            ),
            compiler_params=pltpu.CompilerParams(
                dimension_semantics=("parallel",),   # row tiles shard across v7x's 2 TCs
                vmem_limit_bytes=32 * 1024 * 1024,   # fits v7x's 64 MiB with headroom
            ),
        )(a, b, w1, w2, bias)

    # K-tiled path: weights stay resident in VMEM (fetched once), accumulate in f32 scratch.
    tk = _pick_tk(K)
    return pl.pallas_call(
        functools.partial(_fused_linear2_multi_kernel, relu=relu, tk=tk),
        out_shape=jax.ShapeDtypeStruct((R, C), out_dtype),
        grid_spec=pltpu.PrefetchScalarGridSpec(
            num_scalar_prefetch=0,
            grid=(R // row_tile, K // tk),
            in_specs=[
                pl.BlockSpec((row_tile, tk), lambda i, k: (i, k)),   # a
                pl.BlockSpec((row_tile, tk), lambda i, k: (i, k)),   # b
                pl.BlockSpec((K, C), lambda i, k: (0, 0)),           # W1 fully resident
                pl.BlockSpec((K, C), lambda i, k: (0, 0)),           # W2 fully resident
                pl.BlockSpec((1, C), lambda i, k: (0, 0)),           # bias (resident)
            ],
            out_specs=pl.BlockSpec((row_tile, C), lambda i, k: (i, 0)),
            scratch_shapes=[pltpu.VMEM((row_tile, C), jnp.float32)],
        ),
        compiler_params=pltpu.CompilerParams(
            dimension_semantics=("parallel", "arbitrary"),   # K reduction last
            vmem_limit_bytes=32 * 1024 * 1024,
        ),
    )(a, b, w1, w2, bias)


# --------------------------- model wrapper ---------------------------

def init_params(key, in_features, hidden_features, out_features, num_classes=3):
    ks = jax.random.split(key, 7)

    def lin(k, fan_in, fan_out):
        bound = 1.0 / jnp.sqrt(jnp.float32(fan_in))
        return jax.random.uniform(k, (fan_in, fan_out), jnp.float32, -bound, bound)

    return {
        # SAGEConv 1
        "ws1": lin(ks[0], in_features, hidden_features),
        "wn1": lin(ks[1], in_features, hidden_features),
        "b1":  jnp.zeros((1, hidden_features), jnp.float32),
        # SAGEConv 2
        "ws2": lin(ks[2], hidden_features, out_features),
        "wn2": lin(ks[3], hidden_features, out_features),
        "b2":  jnp.zeros((1, out_features), jnp.float32),
        # MLPPredictor: Linear(in_features * 2, 3)
        "wp":  lin(ks[4], in_features * 2, num_classes),
        "bp":  jax.random.uniform(ks[5], (1, num_classes), jnp.float32,
                                  -1.0 / jnp.sqrt(jnp.float32(in_features * 2)),
                                  1.0 / jnp.sqrt(jnp.float32(in_features * 2))),
    }


@functools.partial(jax.jit, static_argnames=("num_nodes",))
def model_forward(src, dst, x, e, params, *, num_nodes):
    """src/dst: (E,) int32 edge endpoints; x: (N, Fin) node feats; e: (E, De) edge feats (unused)."""
    del e  # MLPPredictor reads edge features but never uses them in the reference module
    N = num_nodes
    E = src.shape[0]
    FIN = x.shape[1]
    FH = params["ws1"].shape[1]
    FO = params["ws2"].shape[1]
    C = params["wp"].shape[1]
    # The PyTorch module only type-checks when out_features == in_features.
    assert FO == FIN, "MLPPredictor expects out_features == in_features"

    # MXU/lane-friendly padded sizes
    FIN_p = _round_up(FIN, 128)
    FH_p = _round_up(FH, 128)
    FO_p = _round_up(FO, 128)
    C_p = _round_up(C, 128)          # lane-dense output: 3 -> 128
    N_p, tr_n = _rows_and_tile(N)
    E_p, tr_e = _rows_and_tile(E)

    bf16 = jnp.bfloat16
    x_p = _pad2(x, (N_p, FIN_p))                                     # f32 input features
    ws1 = _pad2(params["ws1"], (FIN_p, FH_p)).astype(bf16)
    wn1 = _pad2(params["wn1"], (FIN_p, FH_p)).astype(bf16)
    b1 = _pad2(params["b1"], (1, FH_p))
    ws2 = _pad2(params["ws2"], (FH_p, FO_p)).astype(bf16)
    wn2 = _pad2(params["wn2"], (FH_p, FO_p)).astype(bf16)
    b2 = _pad2(params["b2"], (1, FO_p))
    # Split predictor weight: score = h_u @ Wu + h_v @ Wv + b (no concat/relayout in kernel).
    wpu = _pad2(params["wp"][:FO], (FO_p, C_p)).astype(bf16)
    wpv = _pad2(params["wp"][FO:], (FO_p, C_p)).astype(bf16)
    bp = _pad2(params["bp"], (1, C_p))

    # Sparse in-degree + reciprocal (O(E), f32) — no dense adjacency anywhere.
    deg = jnp.zeros((N_p, 1), jnp.float32).at[dst].add(1.0)
    inv_deg = jnp.where(deg > 0.0, 1.0 / deg, 0.0)   # degree-0 nodes -> 0 aggregate (DGL 'mean')

    # TODO(synk): row-granular scatter-add / row gather (graph message passing) stays in XLA —
    # Pallas TPU has no robust fine-grained scatter primitive; all dense MXU math runs in kernels.
    def mean_agg(h):
        # gather may be bf16; scatter-add always accumulates in f32
        msg = h[src].astype(jnp.float32)
        return jnp.zeros((N_p, h.shape[1]), jnp.float32).at[dst].add(msg) * inv_deg

    # ---- SAGEConv layer 1 (mean): relu(fc_self(x) + fc_neigh(mean_neigh(x)) + b), bf16 out ----
    neigh1 = mean_agg(x_p)
    h1 = fused_linear2(x_p.astype(bf16), neigh1.astype(bf16), ws1, wn1, b1,
                       relu=True, row_tile=tr_n, out_dtype=bf16)

    # ---- SAGEConv layer 2 (mean), no activation, bf16 out ----
    neigh2 = mean_agg(h1)
    h2 = fused_linear2(h1, neigh2.astype(bf16), ws2, wn2, b2,
                       relu=False, row_tile=tr_n, out_dtype=bf16)

    # ---- MLPPredictor.apply_edges: score = Wu h_src + Wv h_dst + b (lane-dense 128-wide out) ----
    # Padded indices + bf16 gathers: no f32 gather result, no pad copy, no cast pass.
    src_p = jnp.pad(src, (0, E_p - E))
    dst_p = jnp.pad(dst, (0, E_p - E))
    hu = h2[src_p]
    hv = h2[dst_p]
    scores = fused_linear2(hu, hv, wpu, wpv, bp, relu=False, row_tile=tr_e,
                           out_dtype=jnp.float32)
    return scores[:E, :C]


if __name__ == "__main__":
    key = jax.random.PRNGKey(0)
    k_x, k_e, k_src, k_dst, k_p = jax.random.split(key, 5)

    # Small synthetic graph: 8 nodes, 16 directed edges.
    N = 8
    E = 16
    in_features = 16
    hidden_features = 32
    out_features = 16        # must equal in_features (see NOTE above)
    edge_feat_dim = 4

    x = jax.random.normal(k_x, (N, in_features), jnp.float32)
    e = jax.random.normal(k_e, (E, edge_feat_dim), jnp.float32)
    src = jax.random.randint(k_src, (E,), 0, N, jnp.int32)
    dst = jax.random.randint(k_dst, (E,), 0, N, jnp.int32)

    params = init_params(k_p, in_features, hidden_features, out_features)

    scores = model_forward(src, dst, x, e, params, num_nodes=N)
    jax.block_until_ready(scores)
    assert scores.shape == (E, 3) and scores.dtype == jnp.float32
    print("KERNEL_OK")
</pallas_src>

<mosaic_0001>
module attributes {stable_mosaic.version = 11 : i64} {
  func.func private @main(%arg0: i32) attributes {dimension_semantics = [#tpu.dimension_semantics<core_parallel>], iteration_bounds = array<i64: 2>, tpu.core_type = #tpu.core_type<sc_scalar_subcore>, window_params = []} {
    return
  }
}

module attributes {stable_mosaic.version = 11 : i64} {
  func.func private @main(%arg0: i32) attributes {dimension_semantics = [#tpu.dimension_semantics<core_parallel>], iteration_bounds = array<i64: 2>, tpu.core_type = #tpu.core_type<sc_scalar_subcore>, window_params = []} {
    return
  }
}

module attributes {stable_mosaic.version = 11 : i64} {
  func.func @_fused_linear2_single_kernel(%arg0: i32, %arg1: memref<8x128xbf16, #tpu.memory_space<vmem>>, %arg2: memref<8x128xbf16, #tpu.memory_space<vmem>>, %arg3: memref<128x128xbf16, #tpu.memory_space<vmem>>, %arg4: memref<128x128xbf16, #tpu.memory_space<vmem>>, %arg5: memref<1x128xf32, #tpu.memory_space<vmem>>, %arg6: memref<8x128xbf16, #tpu.memory_space<vmem>>) attributes {dimension_semantics = [#tpu.dimension_semantics<parallel>], iteration_bounds = array<i64: 1>, scalar_prefetch = 0 : i64, scratch_operands = 0 : i64, tpu.core_type = #tpu.core_type<tc>, window_params = [{transform_indices = @transform_0, window_bounds = array<i64: 8, 128>}, {transform_indices = @transform_1, window_bounds = array<i64: 8, 128>}, {pipeline_mode = #tpu.pipeline_mode<synchronous>, transform_indices = @transform_2, window_bounds = array<i64: 128, 128>}, {pipeline_mode = #tpu.pipeline_mode<synchronous>, transform_indices = @transform_3, window_bounds = array<i64: 128, 128>}, {pipeline_mode = #tpu.pipeline_mode<synchronous>, transform_indices = @transform_4, window_bounds = array<i64: 1, 128>}, {transform_indices = @transform_5, window_bounds = array<i64: 8, 128>}]} {
    %c0 = arith.constant 0 : index
    %c0_0 = arith.constant 0 : index
    %0 = vector.load %arg1[%c0, %c0_0] : memref<8x128xbf16, #tpu.memory_space<vmem>>, vector<8x128xbf16>
    %c0_1 = arith.constant 0 : index
    %c0_2 = arith.constant 0 : index
    %1 = vector.load %arg3[%c0_1, %c0_2] : memref<128x128xbf16, #tpu.memory_space<vmem>>, vector<128x128xbf16>
    %cst = arith.constant dense<0.000000e+00> : vector<8x128xf32>
    %2 = tpu.matmul %0, %1, %cst {dimension_numbers = #tpu.dot_dimension_numbers<[1], [0], [0], [1], [0, 0, 1, 1], [], []>} : vector<8x128xbf16>, vector<128x128xbf16>, vector<8x128xf32> -> vector<8x128xf32>
    %c0_3 = arith.constant 0 : index
    %c0_4 = arith.constant 0 : index
    %3 = vector.load %arg2[%c0_3, %c0_4] : memref<8x128xbf16, #tpu.memory_space<vmem>>, vector<8x128xbf16>
    %c0_5 = arith.constant 0 : index
    %c0_6 = arith.constant 0 : index
    %4 = vector.load %arg4[%c0_5, %c0_6] : memref<128x128xbf16, #tpu.memory_space<vmem>>, vector<128x128xbf16>
    %cst_7 = arith.constant dense<0.000000e+00> : vector<8x128xf32>
    %5 = tpu.matmul %3, %4, %cst_7 {dimension_numbers = #tpu.dot_dimension_numbers<[1], [0], [0], [1], [0, 0, 1, 1], [], []>} : vector<8x128xbf16>, vector<128x128xbf16>, vector<8x128xf32> -> vector<8x128xf32>
    %6 = arith.addf %2, %5 : vector<8x128xf32>
    %c0_8 = arith.constant 0 : index
    %c0_9 = arith.constant 0 : index
    %7 = vector.load %arg5[%c0_8, %c0_9] : memref<1x128xf32, #tpu.memory_space<vmem>>, vector<1x128xf32>
    %8 = vector.broadcast %7 : vector<1x128xf32> to vector<8x128xf32>
    %9 = arith.addf %6, %8 : vector<8x128xf32>
    %cst_10 = arith.constant 0.000000e+00 : f32
    %10 = vector.broadcast %cst_10 : f32 to vector<8x128xf32>
    %11 = arith.maximumf %9, %10 : vector<8x128xf32>
    %12 = arith.truncf %11 : vector<8x128xf32> to vector<8x128xbf16>
    %c0_11 = arith.constant 0 : index
    %c0_12 = arith.constant 0 : index
    %13 = vector.load %arg6[%c0_11, %c0_12] : memref<8x128xbf16, #tpu.memory_space<vmem>>, vector<8x128xbf16>
    tpu.vector_store %arg6[%c0_11, %c0_12], %12 {strides = array<i32>} : memref<8x128xbf16, #tpu.memory_space<vmem>>, vector<8x128xbf16>,
    return
  }
  func.func @transform_0(%arg0: i32) -> (i32, i32) {
    %c0_i32 = arith.constant 0 : i32
    %c0_i32_0 = arith.constant 0 : i32
    return %arg0, %c0_i32 : i32, i32
  }
  func.func @transform_1(%arg0: i32) -> (i32, i32) {
    %c0_i32 = arith.constant 0 : i32
    %c0_i32_0 = arith.constant 0 : i32
    return %arg0, %c0_i32 : i32, i32
  }
  func.func @transform_2(%arg0: i32) -> (i32, i32) {
    %c0_i32 = arith.constant 0 : i32
    %c0_i32_0 = arith.constant 0 : i32
    %c0_i32_1 = arith.constant 0 : i32
    return %c0_i32, %c0_i32_0 : i32, i32
  }
  func.func @transform_3(%arg0: i32) -> (i32, i32) {
    %c0_i32 = arith.constant 0 : i32
    %c0_i32_0 = arith.constant 0 : i32
    %c0_i32_1 = arith.constant 0 : i32
    return %c0_i32, %c0_i32_0 : i32, i32
  }
  func.func @transform_4(%arg0: i32) -> (i32, i32) {
    %c0_i32 = arith.constant 0 : i32
    %c0_i32_0 = arith.constant 0 : i32
    %c0_i32_1 = arith.constant 0 : i32
    return %c0_i32, %c0_i32_0 : i32, i32
  }
  func.func @transform_5(%arg0: i32) -> (i32, i32) {
    %c0_i32 = arith.constant 0 : i32
    %c0_i32_0 = arith.constant 0 : i32
    return %arg0, %c0_i32 : i32, i32
  }
}

module attributes {stable_mosaic.version = 11 : i64} {
  func.func @_fused_linear2_single_kernel(%arg0: i32, %arg1: memref<8x128xbf16, #tpu.memory_space<vmem>>, %arg2: memref<8x128xbf16, #tpu.memory_space<vmem>>, %arg3: memref<128x128xbf16, #tpu.memory_space<vmem>>, %arg4: memref<128x128xbf16, #tpu.memory_space<vmem>>, %arg5: memref<1x128xf32, #tpu.memory_space<vmem>>, %arg6: memref<8x128xbf16, #tpu.memory_space<vmem>>) attributes {dimension_semantics = [#tpu.dimension_semantics<parallel>], iteration_bounds = array<i64: 1>, scalar_prefetch = 0 : i64, scratch_operands = 0 : i64, tpu.core_type = #tpu.core_type<tc>, window_params = [{transform_indices = @transform_0, window_bounds = array<i64: 8, 128>}, {transform_indices = @transform_1, window_bounds = array<i64: 8, 128>}, {pipeline_mode = #tpu.pipeline_mode<synchronous>, transform_indices = @transform_2, window_bounds = array<i64: 128, 128>}, {pipeline_mode = #tpu.pipeline_mode<synchronous>, transform_indices = @transform_3, window_bounds = array<i64: 128, 128>}, {pipeline_mode = #tpu.pipeline_mode<synchronous>, transform_indices = @transform_4, window_bounds = array<i64: 1, 128>}, {transform_indices = @transform_5, window_bounds = array<i64: 8, 128>}]} {
    %c0 = arith.constant 0 : index
    %c0_0 = arith.constant 0 : index
    %0 = vector.load %arg1[%c0, %c0_0] : memref<8x128xbf16, #tpu.memory_space<vmem>>, vector<8x128xbf16>
    %c0_1 = arith.constant 0 : index
    %c0_2 = arith.constant 0 : index
    %1 = vector.load %arg3[%c0_1, %c0_2] : memref<128x128xbf16, #tpu.memory_space<vmem>>, vector<128x128xbf16>
    %cst = arith.constant dense<0.000000e+00> : vector<8x128xf32>
    %2 = tpu.matmul %0, %1, %cst {dimension_numbers = #tpu.dot_dimension_numbers<[1], [0], [0], [1], [0, 0, 1, 1], [], []>} : vector<8x128xbf16>, vector<128x128xbf16>, vector<8x128xf32> -> vector<8x128xf32>
    %c0_3 = arith.constant 0 : index
    %c0_4 = arith.constant 0 : index
    %3 = vector.load %arg2[%c0_3, %c0_4] : memref<8x128xbf16, #tpu.memory_space<vmem>>, vector<8x128xbf16>
    %c0_5 = arith.constant 0 : index
    %c0_6 = arith.constant 0 : index
    %4 = vector.load %arg4[%c0_5, %c0_6] : memref<128x128xbf16, #tpu.memory_space<vmem>>, vector<128x128xbf16>
    %cst_7 = arith.constant dense<0.000000e+00> : vector<8x128xf32>
    %5 = tpu.matmul %3, %4, %cst_7 {dimension_numbers = #tpu.dot_dimension_numbers<[1], [0], [0], [1], [0, 0, 1, 1], [], []>} : vector<8x128xbf16>, vector<128x128xbf16>, vector<8x128xf32> -> vector<8x128xf32>
    %6 = arith.addf %2, %5 : vector<8x128xf32>
    %c0_8 = arith.constant 0 : index
    %c0_9 = arith.constant 0 : index
    %7 = vector.load %arg5[%c0_8, %c0_9] : memref<1x128xf32, #tpu.memory_space<vmem>>, vector<1x128xf32>
    %8 = vector.broadcast %7 : vector<1x128xf32> to vector<8x128xf32>
    %9 = arith.addf %6, %8 : vector<8x128xf32>
    %10 = arith.truncf %9 : vector<8x128xf32> to vector<8x128xbf16>
    %c0_10 = arith.constant 0 : index
    %c0_11 = arith.constant 0 : index
    %11 = vector.load %arg6[%c0_10, %c0_11] : memref<8x128xbf16, #tpu.memory_space<vmem>>, vector<8x128xbf16>
    tpu.vector_store %arg6[%c0_10, %c0_11], %10 {strides = array<i32>} : memref<8x128xbf16, #tpu.memory_space<vmem>>, vector<8x128xbf16>,
    return
  }
  func.func @transform_0(%arg0: i32) -> (i32, i32) {
    %c0_i32 = arith.constant 0 : i32
    %c0_i32_0 = arith.constant 0 : i32
    return %arg0, %c0_i32 : i32, i32
  }
  func.func @transform_1(%arg0: i32) -> (i32, i32) {
    %c0_i32 = arith.constant 0 : i32
    %c0_i32_0 = arith.constant 0 : i32
    return %arg0, %c0_i32 : i32, i32
  }
  func.func @transform_2(%arg0: i32) -> (i32, i32) {
    %c0_i32 = arith.constant 0 : i32
    %c0_i32_0 = arith.constant 0 : i32
    %c0_i32_1 = arith.constant 0 : i32
    return %c0_i32, %c0_i32_0 : i32, i32
  }
  func.func @transform_3(%arg0: i32) -> (i32, i32) {
    %c0_i32 = arith.constant 0 : i32
    %c0_i32_0 = arith.constant 0 : i32
    %c0_i32_1 = arith.constant 0 : i32
    return %c0_i32, %c0_i32_0 : i32, i32
  }
  func.func @transform_4(%arg0: i32) -> (i32, i32) {
    %c0_i32 = arith.constant 0 : i32
    %c0_i32_0 = arith.constant 0 : i32
    %c0_i32_1 = arith.constant 0 : i32
    return %c0_i32, %c0_i32_0 : i32, i32
  }
  func.func @transform_5(%arg0: i32) -> (i32, i32) {
    %c0_i32 = arith.constant 0 : i32
    %c0_i32_0 = arith.constant 0 : i32
    return %arg0, %c0_i32 : i32, i32
  }
}

module attributes {stable_mosaic.version = 11 : i64} {
  func.func @_fused_linear2_single_kernel(%arg0: i32, %arg1: memref<8x128xbf16, #tpu.memory_space<vmem>>, %arg2: memref<8x128xbf16, #tpu.memory_space<vmem>>, %arg3: memref<128x128xbf16, #tpu.memory_space<vmem>>, %arg4: memref<128x128xbf16, #tpu.memory_space<vmem>>, %arg5: memref<1x128xf32, #tpu.memory_space<vmem>>, %arg6: memref<8x128xf32, #tpu.memory_space<vmem>>) attributes {dimension_semantics = [#tpu.dimension_semantics<parallel>], iteration_bounds = array<i64: 2>, scalar_prefetch = 0 : i64, scratch_operands = 0 : i64, tpu.core_type = #tpu.core_type<tc>, window_params = [{transform_indices = @transform_0, window_bounds = array<i64: 8, 128>}, {transform_indices = @transform_1, window_bounds = array<i64: 8, 128>}, {pipeline_mode = #tpu.pipeline_mode<synchronous>, transform_indices = @transform_2, window_bounds = array<i64: 128, 128>}, {pipeline_mode = #tpu.pipeline_mode<synchronous>, transform_indices = @transform_3, window_bounds = array<i64: 128, 128>}, {pipeline_mode = #tpu.pipeline_mode<synchronous>, transform_indices = @transform_4, window_bounds = array<i64: 1, 128>}, {transform_indices = @transform_5, window_bounds = array<i64: 8, 128>}]} {
    %c0 = arith.constant 0 : index
    %c0_0 = arith.constant 0 : index
    %0 = vector.load %arg1[%c0, %c0_0] : memref<8x128xbf16, #tpu.memory_space<vmem>>, vector<8x128xbf16>
    %c0_1 = arith.constant 0 : index
    %c0_2 = arith.constant 0 : index
    %1 = vector.load %arg3[%c0_1, %c0_2] : memref<128x128xbf16, #tpu.memory_space<vmem>>, vector<128x128xbf16>
    %cst = arith.constant dense<0.000000e+00> : vector<8x128xf32>
    %2 = tpu.matmul %0, %1, %cst {dimension_numbers = #tpu.dot_dimension_numbers<[1], [0], [0], [1], [0, 0, 1, 1], [], []>} : vector<8x128xbf16>, vector<128x128xbf16>, vector<8x128xf32> -> vector<8x128xf32>
    %c0_3 = arith.constant 0 : index
    %c0_4 = arith.constant 0 : index
    %3 = vector.load %arg2[%c0_3, %c0_4] : memref<8x128xbf16, #tpu.memory_space<vmem>>, vector<8x128xbf16>
    %c0_5 = arith.constant 0 : index
    %c0_6 = arith.constant 0 : index
    %4 = vector.load %arg4[%c0_5, %c0_6] : memref<128x128xbf16, #tpu.memory_space<vmem>>, vector<128x128xbf16>
    %cst_7 = arith.constant dense<0.000000e+00> : vector<8x128xf32>
    %5 = tpu.matmul %3, %4, %cst_7 {dimension_numbers = #tpu.dot_dimension_numbers<[1], [0], [0], [1], [0, 0, 1, 1], [], []>} : vector<8x128xbf16>, vector<128x128xbf16>, vector<8x128xf32> -> vector<8x128xf32>
    %6 = arith.addf %2, %5 : vector<8x128xf32>
    %c0_8 = arith.constant 0 : index
    %c0_9 = arith.constant 0 : index
    %7 = vector.load %arg5[%c0_8, %c0_9] : memref<1x128xf32, #tpu.memory_space<vmem>>, vector<1x128xf32>
    %8 = vector.broadcast %7 : vector<1x128xf32> to vector<8x128xf32>
    %9 = arith.addf %6, %8 : vector<8x128xf32>
    %c0_10 = arith.constant 0 : index
    %c0_11 = arith.constant 0 : index
    %10 = vector.load %arg6[%c0_10, %c0_11] : memref<8x128xf32, #tpu.memory_space<vmem>>, vector<8x128xf32>
    tpu.vector_store %arg6[%c0_10, %c0_11], %9 {strides = array<i32>} : memref<8x128xf32, #tpu.memory_space<vmem>>, vector<8x128xf32>,
    return
  }
  func.func @transform_0(%arg0: i32) -> (i32, i32) {
    %c0_i32 = arith.constant 0 : i32
    %c0_i32_0 = arith.constant 0 : i32
    return %arg0, %c0_i32 : i32, i32
  }
  func.func @transform_1(%arg0: i32) -> (i32, i32) {
    %c0_i32 = arith.constant 0 : i32
    %c0_i32_0 = arith.constant 0 : i32
    return %arg0, %c0_i32 : i32, i32
  }
  func.func @transform_2(%arg0: i32) -> (i32, i32) {
    %c0_i32 = arith.constant 0 : i32
    %c0_i32_0 = arith.constant 0 : i32
    %c0_i32_1 = arith.constant 0 : i32
    return %c0_i32, %c0_i32_0 : i32, i32
  }
  func.func @transform_3(%arg0: i32) -> (i32, i32) {
    %c0_i32 = arith.constant 0 : i32
    %c0_i32_0 = arith.constant 0 : i32
    %c0_i32_1 = arith.constant 0 : i32
    return %c0_i32, %c0_i32_0 : i32, i32
  }
  func.func @transform_4(%arg0: i32) -> (i32, i32) {
    %c0_i32 = arith.constant 0 : i32
    %c0_i32_0 = arith.constant 0 : i32
    %c0_i32_1 = arith.constant 0 : i32
    return %c0_i32, %c0_i32_0 : i32, i32
  }
  func.func @transform_5(%arg0: i32) -> (i32, i32) {
    %c0_i32 = arith.constant 0 : i32
    %c0_i32_0 = arith.constant 0 : i32
    return %arg0, %c0_i32 : i32, i32
  }
}

</mosaic_0001>

<bundles_post_ra>
// kernel: model_forward.3
= control target key start
LH: loop header
LB: loop body
LE: loop exit
PB: predicated region body
PF: predicated region fallthrough
CT: control target
= control target key end

     0   :  { %v339_v0 = vmov 0.0   ;;  %vm340_vm0 = vmmov 0   ;;  %s431_s3 = inlined_call_operand.vmem [shape: bf16[128,128], index: 3, kind: input, shape index: {}]   ;;  %s432_s2 = inlined_call_operand.vmem [shape: bf16[128,128], index: 2, kind: input, shape index: {}]   ;;  %s433_s1 = inlined_call_operand.vmem [shape: bf16[8,128], index: 1, kind: input, shape index: {}]   ;;  %s434_s0 = inlined_call_operand.vmem [shape: bf16[8,128], index: 0, kind: input, shape index: {}]   ;;  %s435_s4 = inlined_call_operand.vmem [shape: f32[1,128], index: 4, kind: input, shape index: {}]   ;;  %s436_s5 = inlined_call_operand.vmem [shape: bf16[8,128], index: 5, kind: output, shape index: {}]  }
   0x1   :  { %281 = vmatprep.subr.bf16.mxu0 %v339_v0  ;;  %301 = vmatprep.subr.bf16.mxu1 %v339_v0  ;;  %v323_v1 = vld [vmem:[%s431_s3] sm:$0xff]   ;;  %v325_v3 = vld [vmem:[%s431_s3 + $0x8] sm:$0xff]   ;;  %v327_v5 = vld [vmem:[%s431_s3 + $0x10] sm:$0xff]  }
   0x2   :  { %v324_v2 = vld [vmem:[%s432_s2] sm:$0xff]   ;;  %297 = vmatprep.mubr.msk.bf16.mxu0 %vm340_vm0, %v339_v0  ;;  %317 = vmatprep.mubr.msk.bf16.mxu1 %vm340_vm0, %v339_v0  ;;  %v326_v4 = vld [vmem:[%s432_s2 + $0x8] sm:$0xff]   ;;  %v328_v6 = vld [vmem:[%s432_s2 + $0x10] sm:$0xff]  }
   0x3   :  { %282 = vmatpush3.bf16.msra.mxu0 %v323_v1  ;;  %302 = vmatpush3.bf16.msra.mxu1 %v324_v2  ;;  %v329_v7 = vld [vmem:[%s431_s3 + $0x18] sm:$0xff]   ;;  %v331_v9 = vld [vmem:[%s431_s3 + $0x20] sm:$0xff]   ;;  %v333_v11 = vld [vmem:[%s431_s3 + $0x28] sm:$0xff]  }
   0x4   :  { %283 = vmatprep.subr.bf16.mxu0 %v339_v0  ;;  %303 = vmatprep.subr.bf16.mxu1 %v339_v0  ;;  %v330_v8 = vld [vmem:[%s432_s2 + $0x18] sm:$0xff]   ;;  %v332_v10 = vld [vmem:[%s432_s2 + $0x20] sm:$0xff]   ;;  %v334_v12 = vld [vmem:[%s432_s2 + $0x28] sm:$0xff]  }
   0x5   :  { %v335_v13 = vld [vmem:[%s431_s3 + $0x30] sm:$0xff]   ;;  %v337_v15 = vld [vmem:[%s431_s3 + $0x38] sm:$0xff]   ;;  %v38_v17 = vld [vmem:[%s433_s1] sm:$0xf] }
   0x6   :  { %v336_v14 = vld [vmem:[%s432_s2 + $0x30] sm:$0xff]   ;;  %v338_v16 = vld [vmem:[%s432_s2 + $0x38] sm:$0xff]   ;;  %v21_v18 = vld [vmem:[%s434_s0] sm:$0xf] }
   0x7   :  { %284 = vmatpush3.bf16.msra.mxu0 %v325_v3  ;;  %304 = vmatpush3.bf16.msra.mxu1 %v326_v4  ;;  %v262_v21 = vld [vmem:[%s435_s4] ss:$0 sm:$0xff] }
   0x8   :  { %285 = vmatprep.subr.bf16.mxu0 %v339_v0  ;;  %305 = vmatprep.subr.bf16.mxu1 %v339_v0 }
   0xb   :  { %286 = vmatpush3.bf16.msra.mxu0 %v327_v5  ;;  %306 = vmatpush3.bf16.msra.mxu1 %v328_v6 }
   0xc   :  { %287 = vmatprep.subr.bf16.mxu0 %v339_v0  ;;  %307 = vmatprep.subr.bf16.mxu1 %v339_v0 }
   0xf   :  { %288 = vmatpush3.bf16.msra.mxu0 %v329_v7  ;;  %308 = vmatpush3.bf16.msra.mxu1 %v330_v8 }
  0x10   :  { %289 = vmatprep.subr.bf16.mxu0 %v339_v0  ;;  %309 = vmatprep.subr.bf16.mxu1 %v339_v0 }
  0x13   :  { %290 = vmatpush3.bf16.msra.mxu0 %v331_v9  ;;  %310 = vmatpush3.bf16.msra.mxu1 %v332_v10 }
  0x14   :  { %291 = vmatprep.subr.bf16.mxu0 %v339_v0  ;;  %311 = vmatprep.subr.bf16.mxu1 %v339_v0 }
  0x17   :  { %292 = vmatpush3.bf16.msra.mxu0 %v333_v11  ;;  %312 = vmatpush3.bf16.msra.mxu1 %v334_v12 }
  0x18   :  { %293 = vmatprep.subr.bf16.mxu0 %v339_v0  ;;  %313 = vmatprep.subr.bf16.mxu1 %v339_v0 }
  0x1b   :  { %294 = vmatpush3.bf16.msra.mxu0 %v335_v13  ;;  %314 = vmatpush3.bf16.msra.mxu1 %v336_v14 }
  0x1c   :  { %295 = vmatprep.subr.bf16.mxu0 %v339_v0  ;;  %315 = vmatprep.subr.bf16.mxu1 %v339_v0 }
  0x1f   :  { %296 = vmatpush3.bf16.msra.mxu0 %v337_v15  ;;  %316 = vmatpush3.bf16.msra.mxu1 %v338_v16 }
  0x22   :  { %298 = vmatmul.mubr.bf16.vlgmr.msra.gmra.mrb[0].mxu0 %v38_v17  ;;  %318 = vmatmul.mubr.bf16.vlgmr.msra.gmra.mrb[0].mxu1 %v21_v18 }
  0xf5   :  { %v137_v19 = vpop.f32.mrb[0].mxu0  ;;  %v225_v20 = vpop.f32.mrb[0].mxu1 }
  0xf6   :  { %v299_v22 = vpop.f32.mrb[1].mxu0  ;;  %v226_v23 = vadd.f32 %v225_v20, %v137_v19  ;;  %v319_v24 = vpop.f32.mrb[1].mxu1 }
  0xf7   :  { %v140_v25 = vpop.f32.mrb[2].mxu0  ;;  %v228_v26 = vpop.f32.mrb[2].mxu1 }
  0xf8   :  { %v300_v27 = vpop.f32.mrb[3].mxu0  ;;  %v238_v28 = vadd.f32 %v262_v21, %v226_v23  ;;  %v320_v29 = vpop.f32.mrb[3].mxu1 }
  0xfa   :  { %v239_v30 = vmax.f32 %v238_v28, 0.0 }
  0xfc   :  { %v240_v31 = vpack.c.bf16 %v239_v30, %v239_v30 }
  0xfe   :  { %241 = vst [vmem:[%s436_s5] sm:$0xf] %v240_v31 }

// kernel: model_forward.4
= control target key start
LH: loop header
LB: loop body
LE: loop exit
PB: predicated region body
PF: predicated region fallthrough
CT: control target
= control target key end

     0   :  { %v338_v0 = vmov 0.0   ;;  %vm339_vm0 = vmmov 0   ;;  %s430_s3 = inlined_call_operand.vmem [shape: bf16[128,128], index: 3, kind: input, shape index: {}]   ;;  %s431_s2 = inlined_call_operand.vmem [shape: bf16[128,128], index: 2, kind: input, shape index: {}]   ;;  %s432_s1 = inlined_call_operand.vmem [shape: bf16[8,128], index: 1, kind: input, shape index: {}]   ;;  %s433_s0 = inlined_call_operand.vmem [shape: bf16[8,128], index: 0, kind: input, shape index: {}]   ;;  %s434_s4 = inlined_call_operand.vmem [shape: f32[1,128], index: 4, kind: input, shape index: {}]   ;;  %s435_s5 = inlined_call_operand.vmem [shape: bf16[8,128], index: 5, kind: output, shape index: {}]  }
   0x1   :  { %280 = vmatprep.subr.bf16.mxu0 %v338_v0  ;;  %300 = vmatprep.subr.bf16.mxu1 %v338_v0  ;;  %v322_v1 = vld [vmem:[%s430_s3] sm:$0xff]   ;;  %v324_v3 = vld [vmem:[%s430_s3 + $0x8] sm:$0xff]   ;;  %v326_v5 = vld [vmem:[%s430_s3 + $0x10] sm:$0xff]  }
   0x2   :  { %v323_v2 = vld [vmem:[%s431_s2] sm:$0xff]   ;;  %296 = vmatprep.mubr.msk.bf16.mxu0 %vm339_vm0, %v338_v0  ;;  %316 = vmatprep.mubr.msk.bf16.mxu1 %vm339_vm0, %v338_v0  ;;  %v325_v4 = vld [vmem:[%s431_s2 + $0x8] sm:$0xff]   ;;  %v327_v6 = vld [vmem:[%s431_s2 + $0x10] sm:$0xff]  }
   0x3   :  { %281 = vmatpush3.bf16.msra.mxu0 %v322_v1  ;;  %301 = vmatpush3.bf16.msra.mxu1 %v323_v2  ;;  %v328_v7 = vld [vmem:[%s430_s3 + $0x18] sm:$0xff]   ;;  %v330_v9 = vld [vmem:[%s430_s3 + $0x20] sm:$0xff]   ;;  %v332_v11 = vld [vmem:[%s430_s3 + $0x28] sm:$0xff]  }
   0x4   :  { %282 = vmatprep.subr.bf16.mxu0 %v338_v0  ;;  %302 = vmatprep.subr.bf16.mxu1 %v338_v0  ;;  %v329_v8 = vld [vmem:[%s431_s2 + $0x18] sm:$0xff]   ;;  %v331_v10 = vld [vmem:[%s431_s2 + $0x20] sm:$0xff]   ;;  %v333_v12 = vld [vmem:[%s431_s2 + $0x28] sm:$0xff]  }
   0x5   :  { %v334_v13 = vld [vmem:[%s430_s3 + $0x30] sm:$0xff]   ;;  %v336_v15 = vld [vmem:[%s430_s3 + $0x38] sm:$0xff]   ;;  %v38_v17 = vld [vmem:[%s432_s1] sm:$0xf] }
   0x6   :  { %v335_v14 = vld [vmem:[%s431_s2 + $0x30] sm:$0xff]   ;;  %v337_v16 = vld [vmem:[%s431_s2 + $0x38] sm:$0xff]   ;;  %v21_v18 = vld [vmem:[%s433_s0] sm:$0xf] }
   0x7   :  { %283 = vmatpush3.bf16.msra.mxu0 %v324_v3  ;;  %303 = vmatpush3.bf16.msra.mxu1 %v325_v4  ;;  %v261_v21 = vld [vmem:[%s434_s4] ss:$0 sm:$0xff] }
   0x8   :  { %284 = vmatprep.subr.bf16.mxu0 %v338_v0  ;;  %304 = vmatprep.subr.bf16.mxu1 %v338_v0 }
   0xb   :  { %285 = vmatpush3.bf16.msra.mxu0 %v326_v5  ;;  %305 = vmatpush3.bf16.msra.mxu1 %v327_v6 }
   0xc   :  { %286 = vmatprep.subr.bf16.mxu0 %v338_v0  ;;  %306 = vmatprep.subr.bf16.mxu1 %v338_v0 }
   0xf   :  { %287 = vmatpush3.bf16.msra.mxu0 %v328_v7  ;;  %307 = vmatpush3.bf16.msra.mxu1 %v329_v8 }
  0x10   :  { %288 = vmatprep.subr.bf16.mxu0 %v338_v0  ;;  %308 = vmatprep.subr.bf16.mxu1 %v338_v0 }
  0x13   :  { %289 = vmatpush3.bf16.msra.mxu0 %v330_v9  ;;  %309 = vmatpush3.bf16.msra.mxu1 %v331_v10 }
  0x14   :  { %290 = vmatprep.subr.bf16.mxu0 %v338_v0  ;;  %310 = vmatprep.subr.bf16.mxu1 %v338_v0 }
  0x17   :  { %291 = vmatpush3.bf16.msra.mxu0 %v332_v11  ;;  %311 = vmatpush3.bf16.msra.mxu1 %v333_v12 }
  0x18   :  { %292 = vmatprep.subr.bf16.mxu0 %v338_v0  ;;  %312 = vmatprep.subr.bf16.mxu1 %v338_v0 }
  0x1b   :  { %293 = vmatpush3.bf16.msra.mxu0 %v334_v13  ;;  %313 = vmatpush3.bf16.msra.mxu1 %v335_v14 }
  0x1c   :  { %294 = vmatprep.subr.bf16.mxu0 %v338_v0  ;;  %314 = vmatprep.subr.bf16.mxu1 %v338_v0 }
  0x1f   :  { %295 = vmatpush3.bf16.msra.mxu0 %v336_v15  ;;  %315 = vmatpush3.bf16.msra.mxu1 %v337_v16 }
  0x22   :  { %297 = vmatmul.mubr.bf16.vlgmr.msra.gmra.mrb[0].mxu0 %v38_v17  ;;  %317 = vmatmul.mubr.bf16.vlgmr.msra.gmra.mrb[0].mxu1 %v21_v18 }
  0xf5   :  { %v137_v19 = vpop.f32.mrb[0].mxu0  ;;  %v225_v20 = vpop.f32.mrb[0].mxu1 }
  0xf6   :  { %v298_v22 = vpop.f32.mrb[1].mxu0  ;;  %v226_v23 = vadd.f32 %v225_v20, %v137_v19  ;;  %v318_v24 = vpop.f32.mrb[1].mxu1 }
  0xf7   :  { %v140_v25 = vpop.f32.mrb[2].mxu0  ;;  %v228_v26 = vpop.f32.mrb[2].mxu1 }
  0xf8   :  { %v299_v27 = vpop.f32.mrb[3].mxu0  ;;  %v238_v28 = vadd.f32 %v261_v21, %v226_v23  ;;  %v319_v29 = vpop.f32.mrb[3].mxu1 }
  0xfa   :  { %v239_v30 = vpack.c.bf16 %v238_v28, %v238_v28 }
  0xfc   :  { %240 = vst [vmem:[%s435_s5] sm:$0xf] %v239_v30 }

// kernel: model_forward.5
= control target key start
LH: loop header
LB: loop body
LE: loop exit
PB: predicated region body
PF: predicated region fallthrough
CT: control target
= control target key end

     0   :  { %s673_s18 = smov 0   ;;  %s752_s0 = inlined_call_operand.vmem [shape: bf16[16,128], index: 0, kind: input, shape index: {}]   ;;  %s753_s1 = inlined_call_operand.vmem [shape: bf16[16,128], index: 1, kind: input, shape index: {}]   ;;  %s754_s2 = inlined_call_operand.vmem [shape: bf16[128,128], index: 2, kind: input, shape index: {}]   ;;  %s755_s3 = inlined_call_operand.vmem [shape: bf16[128,128], index: 3, kind: input, shape index: {}]   ;;  %s756_s4 = inlined_call_operand.vmem [shape: f32[1,128], index: 4, kind: input, shape index: {}]   ;;  %s757_s5 = inlined_call_operand.vmem [shape: f32[16,128], index: 5, kind: output, shape index: {}]  }
   0x1 LB: > { %s522_s19 = sadd.s32 4294967295, %s639_s18   ;;  %p526_p0 = scmp.ge.s32.totalorder %s639_s18, 1  ;;  %s639_s18 = sphi %s673_s18, %s15_s18  }
   0x2   : > { %p195_p1 = scmp.lt.s32.totalorder %s639_s18, 3 }
   0x4   : > { %p196_p2 = pnand %p526_p0, %p195_p1 }
   0x5   : > { %v617_v0 = vld [vmem:[%s755_s3] sm:$0xff] (!%p196_p2)   ;;  %v641_v1 = vmov (!%p196_p2), 0.0   ;;  %v619_v3 = vld [vmem:[%s755_s3 + $0x8] sm:$0xff] (!%p196_p2)   ;;  %vm642_vm0 = vmmov (!%p196_p2), 0   ;;  %v621_v5 = vld [vmem:[%s755_s3 + $0x10] sm:$0xff] (!%p196_p2)   ;;  %p225_p3 = scmp.lt.s32.totalorder (!%p196_p2), %s522_s19, 1 }
   0x6   : > { %199 = sbr.rel (%p196_p2) target bundleno = 256 (0x100), region = 40  ;;  %567 = vmatprep.subr.bf16.mxu0 (!%p196_p2), %v641_v1  ;;  %587 = vmatprep.subr.bf16.mxu1 (!%p196_p2), %v641_v1  ;;  %v618_v2 = vld [vmem:[%s754_s2] sm:$0xff] (!%p196_p2)   ;;  %v620_v4 = vld [vmem:[%s754_s2 + $0x8] sm:$0xff] (!%p196_p2)   ;;  %v622_v6 = vld [vmem:[%s754_s2 + $0x10] sm:$0xff] (!%p196_p2)  }
   0x7   : > { %568 = vmatpush3.bf16.msra.mxu0 (!%p196_p2), %v617_v0  ;;  %583 = vmatprep.mubr.msk.bf16.mxu0 (!%p196_p2), %vm642_vm0, %v641_v1  ;;  %v623_v7 = vld [vmem:[%s755_s3 + $0x18] sm:$0xff] (!%p196_p2)   ;;  %v625_v9 = vld [vmem:[%s755_s3 + $0x20] sm:$0xff] (!%p196_p2)   ;;  %v627_v11 = vld [vmem:[%s755_s3 + $0x28] sm:$0xff] (!%p196_p2)  }
   0x8   : > { %588 = vmatpush3.bf16.msra.mxu1 (!%p196_p2), %v618_v2  ;;  %569 = vmatprep.subr.bf16.mxu0 (!%p196_p2), %v641_v1  ;;  %v624_v8 = vld [vmem:[%s754_s2 + $0x18] sm:$0xff] (!%p196_p2)   ;;  %v626_v10 = vld [vmem:[%s754_s2 + $0x20] sm:$0xff] (!%p196_p2)   ;;  %v628_v12 = vld [vmem:[%s754_s2 + $0x28] sm:$0xff] (!%p196_p2)  }
   0x9   : > { %589 = vmatprep.subr.bf16.mxu1 (!%p196_p2), %v641_v1  ;;  %603 = vmatprep.mubr.msk.bf16.mxu1 (!%p196_p2), %vm642_vm0, %v641_v1  ;;  %v629_v13 = vld [vmem:[%s755_s3 + $0x30] sm:$0xff] (!%p196_p2)   ;;  %v631_v15 = vld [vmem:[%s755_s3 + $0x38] sm:$0xff] (!%p196_p2)   ;;  %v546_v21 = vld [vmem:[%s756_s4] ss:$0 sm:$0xff] (!%p196_p2) }
   0xa   : > { %v630_v14 = vld [vmem:[%s754_s2 + $0x30] sm:$0xff] (!%p196_p2)   ;;  %v632_v16 = vld [vmem:[%s754_s2 + $0x38] sm:$0xff] (!%p196_p2)  }
   0xb   : > { %570 = vmatpush3.bf16.msra.mxu0 (!%p196_p2), %v619_v3 }
   0xc   : > { %590 = vmatpush3.bf16.msra.mxu1 (!%p196_p2), %v620_v4  ;;  %571 = vmatprep.subr.bf16.mxu0 (!%p196_p2), %v641_v1 }
   0xd   : > { %591 = vmatprep.subr.bf16.mxu1 %v641_v1  ;;  %s759_s19 = smov (!%p225_p3, %s522_s19), 1 }
   0xe   : > { %s527_s25 = sshll.u32 %s759_s19, 2  ;;  %s529_s11 = sshll.u32 %s759_s19, 3 }
   0xf   : > { %572 = vmatpush3.bf16.msra.mxu0 %v621_v5  ;;  %s232_s7 = scalar_lea.vmem %s753_s1, %s527_s25  ;;  %s228_s10 = scalar_lea.vmem %s752_s0, %s527_s25 }
  0x10   : > { %592 = vmatpush3.bf16.msra.mxu1 %v622_v6  ;;  %573 = vmatprep.subr.bf16.mxu0 %v641_v1  ;;  %v255_v17 = vld [vmem:[%s232_s7] sm:$0xf]  ;;  %s236_s16 = scalar_lea.vmem %s757_s5, %s529_s11 }
  0x11   : > { %593 = vmatprep.subr.bf16.mxu1 %v641_v1  ;;  %v238_v18 = vld [vmem:[%s228_s10] sm:$0xf] }
  0x13   : > { %574 = vmatpush3.bf16.msra.mxu0 %v623_v7 }
  0x14   : > { %594 = vmatpush3.bf16.msra.mxu1 %v624_v8  ;;  %575 = vmatprep.subr.bf16.mxu0 %v641_v1 }
  0x15   : > { %595 = vmatprep.subr.bf16.mxu1 %v641_v1 }
  0x17   : > { %576 = vmatpush3.bf16.msra.mxu0 %v625_v9 }
  0x18   : > { %596 = vmatpush3.bf16.msra.mxu1 %v626_v10  ;;  %577 = vmatprep.subr.bf16.mxu0 %v641_v1 }
  0x19   : > { %597 = vmatprep.subr.bf16.mxu1 %v641_v1 }
  0x1b   : > { %578 = vmatpush3.bf16.msra.mxu0 %v627_v11 }
  0x1c   : > { %598 = vmatpush3.bf16.msra.mxu1 %v628_v12  ;;  %579 = vmatprep.subr.bf16.mxu0 %v641_v1 }
  0x1d   : > { %599 = vmatprep.subr.bf16.mxu1 %v641_v1 }
  0x1f   : > { %580 = vmatpush3.bf16.msra.mxu0 %v629_v13 }
  0x20   : > { %600 = vmatpush3.bf16.msra.mxu1 %v630_v14  ;;  %581 = vmatprep.subr.bf16.mxu0 %v641_v1 }
  0x21   : > { %601 = vmatprep.subr.bf16.mxu1 %v641_v1 }
  0x23   : > { %582 = vmatpush3.bf16.msra.mxu0 %v631_v15 }
  0x24   : > { %602 = vmatpush3.bf16.msra.mxu1 %v632_v16 }
  0x26   : > { %584 = vmatmul.mubr.bf16.vlgmr.msra.gmra.mrb[0].mxu0 %v255_v17 }
  0x27   : > { %604 = vmatmul.mubr.bf16.vlgmr.msra.gmra.mrb[0].mxu1 %v238_v18 }
  0xf9   : > { %v354_v19 = vpop.f32.mrb[0].mxu0 }
  0xfa   : > { %v442_v20 = vpop.f32.mrb[0].mxu1  ;;  %v585_v22 = vpop.f32.mrb[1].mxu0 }
  0xfb   : > { %v443_v23 = vadd.f32 %v442_v20, %v354_v19  ;;  %v605_v24 = vpop.f32.mrb[1].mxu1  ;;  %v357_v25 = vpop.f32.mrb[2].mxu0 }
  0xfc   : > { %v445_v26 = vpop.f32.mrb[2].mxu1  ;;  %v586_v27 = vpop.f32.mrb[3].mxu0 }
  0xfd   : > { %v455_v28 = vadd.f32 %v546_v21, %v443_v23  ;;  %v606_v29 = vpop.f32.mrb[3].mxu1 }
  0xff   : > { %456 = vst [vmem:[%s236_s16] sm:$0xff] %v455_v28 }
 0x100 PF: > { %s15_s18 = sadd.s32 1, %s639_s18  }
 0x101   : > { %p12_p4 = scmp.ge.s32.totalorder %s15_s18, 4  }
 0x103   :  { %14 = sbr.rel (!%p12_p4) target bundleno = 1 (0x1), region = 73 }

</bundles_post_ra>
